<compile_context>
chip_gen: v7x
topology: tpu7x:2x2x1
jax: 0.10.0
libtpu: 0.0.40
codegen_flags: <defaults>
</compile_context>

<pallas_src>
import jax
import jax.numpy as jnp
from jax.experimental import pallas as pl
from jax.experimental.pallas import tpu as pltpu

LANE = 128                  # vreg lane width; last dim of the slab
SUBLANE = 8                 # row-block granularity (8,128 tiling)
_MIN_PIPELINE_ROWS = 256    # below this a single block is fine (launch-cost dominated)
_MIN_STEPS = 4              # >= 4 near-equal blocks once pipelining matters


def _sigmoid_mapper_kernel(score_ref, x_ref, o_ref):
    # min_score is statically 0 in the module, so forward = sigmoid(x) * score.
    # sigmoid(x) = 0.5 * tanh(x/2) + 0.5 -> exactly one EUP op per vreg.
    x = x_ref[...].astype(jnp.float32)
    sig = jnp.tanh(x * 0.5) * 0.5 + 0.5
    o_ref[...] = (sig * score_ref[0]).astype(o_ref.dtype)


def _round_up(v, m):
    return ((v + m - 1) // m) * m


def _default_tile_rows():
    # ~4 MiB f32 blocks by default; ~8 MiB on v7x-class parts (64 MiB VMEM,
    # highest HBM BW) where per-step overhead would otherwise be exposed.
    try:
        vmem_bytes = pltpu.get_tpu_info().vmem_capacity_bytes
    except Exception:  # non-TPU tracing / older runtimes: fall back safely
        return 8192
    return 16384 if vmem_bytes <= (64 << 20) else 8192


def _choose_block_rows(rows, tile_rows):
    """Pick a row-block size that (a) caps per-block VMEM at tile_rows rows,
    (b) yields >= _MIN_STEPS near-equal blocks once the input is non-trivial,
    and (c) yields an even number of blocks so both v7x TensorCores stay busy."""
    steps = pl.cdiv(rows, tile_rows)
    if rows >= _MIN_PIPELINE_ROWS:
        steps = max(steps, _MIN_STEPS)
    if steps > 1 and steps % 2:
        steps += 1                       # even step count -> balanced 2-TC split
    if steps == 1:
        return rows                      # full-extent block: always legal
    return _round_up(pl.cdiv(rows, steps), SUBLANE)


def sigmoid_mapper(x, score, *, tile_rows=None):
    """Apply SigmoidMapper (min_score=0, max_score=score) to any-shape x."""
    # Mirrors the nn.Module's `assert self.min_score < self.max_score`
    # (only checkable for concrete Python scalars; traced scores skip it).
    if isinstance(score, (int, float)):
        assert float(score) > 0.0, "SigmoidMapper requires max_score > min_score (=0)"

    orig_shape = x.shape
    orig_dtype = x.dtype
    n = x.size
    if n == 0:                                   # degenerate: nothing to do
        return jnp.asarray(x).reshape(orig_shape)

    if tile_rows is None:
        tile_rows = _default_tile_rows()

    # Scalar score lives in SMEM -> no recompile per distinct score value.
    score_arr = jnp.asarray(score, dtype=jnp.float32).reshape((1,))

    # Lane-dense (rows, 128) slab. Only a sub-128 tail is ever padded; typical
    # conv score maps (flat size % 128 == 0) hit the zero-copy reshape path.
    # TODO(synk): the ragged pad+slice path still costs extra HBM passes; the
    # real fix is fusing this epilogue into its producer (allow_input_fusion)
    # rather than running it standalone.
    rem = n % LANE
    if rem != 0:
        x_flat = jnp.pad(x.reshape(-1), (0, LANE - rem))
    else:
        x_flat = x.reshape(-1)
    rows = x_flat.size // LANE
    x2d = x_flat.reshape(rows, LANE)

    tr = _choose_block_rows(rows, tile_rows)
    grid = (pl.cdiv(rows, tr),)

    # VMEM budget: double-buffered input + output blocks, plus headroom.
    blk_bytes = tr * LANE * (x2d.dtype.itemsize + jnp.dtype(orig_dtype).itemsize)
    vmem_limit = max(2 * blk_bytes + (4 << 20), 16 << 20)

    out2d = pl.pallas_call(
        _sigmoid_mapper_kernel,
        out_shape=jax.ShapeDtypeStruct((rows, LANE), orig_dtype),
        grid=grid,
        in_specs=[
            pl.BlockSpec(memory_space=pltpu.MemorySpace.SMEM),  # score scalar
            pl.BlockSpec((tr, LANE), lambda i: (i, 0)),         # x tile
        ],
        out_specs=pl.BlockSpec((tr, LANE), lambda i: (i, 0)),
        compiler_params=pltpu.CompilerParams(
            dimension_semantics=("parallel",),   # shards blocks across v7x's 2 TCs
            vmem_limit_bytes=int(vmem_limit),
        ),
    )(score_arr, x2d)

    if rem != 0:
        return out2d.reshape(-1)[:n].reshape(orig_shape)
    return out2d.reshape(orig_shape)


if __name__ == "__main__":
    score = 5.0  # max_score; min_score fixed at 0 per module semantics

    # 1) Primary example: small NCHW score map (flat size % 128 == 0 -> no pad,
    #    single full-extent block).
    x = jax.random.normal(jax.random.PRNGKey(0), (2, 4, 16, 16), dtype=jnp.float32)
    out = jax.block_until_ready(sigmoid_mapper(x, score))
    ref = 0.0 + jax.nn.sigmoid(x) * (score - 0.0)
    assert out.shape == x.shape and out.dtype == x.dtype
    assert jnp.max(jnp.abs(out - ref)) < 1e-5

    # 2) Ragged flat size (exercises the sub-128 pad + slice path).
    x2 = jax.random.normal(jax.random.PRNGKey(1), (3, 5, 7), dtype=jnp.float32)
    out2 = jax.block_until_ready(sigmoid_mapper(x2, score))
    ref2 = jax.nn.sigmoid(x2) * score
    assert out2.shape == x2.shape
    assert jnp.max(jnp.abs(out2 - ref2)) < 1e-5

    # 3) Multi-step grid with a masked partial final block (rows=100, tr=32).
    x3 = jax.random.normal(jax.random.PRNGKey(2), (2, 4, 100, 16), dtype=jnp.float32)
    out3 = jax.block_until_ready(sigmoid_mapper(x3, score, tile_rows=32))
    ref3 = jax.nn.sigmoid(x3) * score
    assert out3.shape == x3.shape
    assert jnp.max(jnp.abs(out3 - ref3)) < 1e-5

    # 4) Medium input: exercises the forced >=4-step, even, balanced grid path.
    x4 = jax.random.normal(jax.random.PRNGKey(3), (2, 4, 64, 128), dtype=jnp.float32)
    out4 = jax.block_until_ready(sigmoid_mapper(x4, score))
    ref4 = jax.nn.sigmoid(x4) * score
    assert out4.shape == x4.shape
    assert jnp.max(jnp.abs(out4 - ref4)) < 1e-5

    # 5) Zero-size input guard.
    x5 = jnp.zeros((0, 4), dtype=jnp.float32)
    out5 = jax.block_until_ready(sigmoid_mapper(x5, score))
    assert out5.shape == x5.shape

    print("KERNEL_OK")
</pallas_src>

<mosaic_0001>
module attributes {stable_mosaic.version = 11 : i64} {
  func.func @_sigmoid_mapper_kernel(%arg0: i32, %arg1: memref<1xf32, #tpu.memory_space<smem>>, %arg2: memref<16x128xf32, #tpu.memory_space<vmem>>, %arg3: memref<16x128xf32, #tpu.memory_space<vmem>>) attributes {dimension_semantics = [#tpu.dimension_semantics<parallel>], iteration_bounds = array<i64: 1>, scalar_prefetch = 0 : i64, scratch_operands = 0 : i64, tpu.core_type = #tpu.core_type<tc>, window_params = [{transform_indices = @transform_0, window_bounds = array<i64: 1>}, {transform_indices = @transform_1, window_bounds = array<i64: 16, 128>}, {transform_indices = @transform_2, window_bounds = array<i64: 16, 128>}]} {
    %c0 = arith.constant 0 : index
    %c0_0 = arith.constant 0 : index
    %0 = vector.load %arg2[%c0, %c0_0] : memref<16x128xf32, #tpu.memory_space<vmem>>, vector<16x128xf32>
    %cst = arith.constant 5.000000e-01 : f32
    %1 = vector.broadcast %cst : f32 to vector<16x128xf32>
    %2 = arith.mulf %0, %1 : vector<16x128xf32>
    %3 = math.tanh %2 : vector<16x128xf32>
    %cst_1 = arith.constant 5.000000e-01 : f32
    %4 = vector.broadcast %cst_1 : f32 to vector<16x128xf32>
    %5 = arith.mulf %3, %4 : vector<16x128xf32>
    %cst_2 = arith.constant 5.000000e-01 : f32
    %6 = vector.broadcast %cst_2 : f32 to vector<16x128xf32>
    %7 = arith.addf %5, %6 : vector<16x128xf32>
    %c0_3 = arith.constant 0 : index
    %8 = memref.load %arg1[%c0_3] : memref<1xf32, #tpu.memory_space<smem>>
    %9 = vector.broadcast %8 : f32 to vector<16x128xf32>
    %10 = arith.mulf %7, %9 : vector<16x128xf32>
    %c0_4 = arith.constant 0 : index
    %c0_5 = arith.constant 0 : index
    %11 = vector.load %arg3[%c0_4, %c0_5] : memref<16x128xf32, #tpu.memory_space<vmem>>, vector<16x128xf32>
    tpu.vector_store %arg3[%c0_4, %c0_5], %10 {strides = array<i32>} : memref<16x128xf32, #tpu.memory_space<vmem>>, vector<16x128xf32>,
    return
  }
  func.func @transform_0(%arg0: i32) -> i32 {
    %c0_i32 = arith.constant 0 : i32
    %c0_i32_0 = arith.constant 0 : i32
    return %c0_i32 : i32
  }
  func.func @transform_1(%arg0: i32) -> (i32, i32) {
    %c0_i32 = arith.constant 0 : i32
    %c0_i32_0 = arith.constant 0 : i32
    return %arg0, %c0_i32 : i32, i32
  }
  func.func @transform_2(%arg0: i32) -> (i32, i32) {
    %c0_i32 = arith.constant 0 : i32
    %c0_i32_0 = arith.constant 0 : i32
    return %arg0, %c0_i32 : i32, i32
  }
}

</mosaic_0001>

<bundles_post_ra>
// kernel: tpu_custom_call.1
= control target key start
LH: loop header
LB: loop body
LE: loop exit
PB: predicated region body
PF: predicated region fallthrough
CT: control target
= control target key end

     0   :  { %8 = vsyncpa [#allocation4], 0  ;;  %s168_s0 = inlined_call_operand.<no memory space> [shape: f32[1], index: 0, kind: input, shape index: {}]   ;;  %s169_s1 = inlined_call_operand.hbm [shape: f32[16,128], index: 1, kind: input, shape index: {}]   ;;  %s170_s2 = inlined_call_operand.hbm [shape: f32[16,128], index: 2, kind: output, shape index: {}]  }
   0x1   :  { %9 = vsyncpa [#allocation5], 0  ;;  %s116_s9 = smov [#allocation3]   ;;  %s68_s13 = scalar_lea.hbm %s169_s1, 256 }
   0x2   :  { %s17_s10 = sshll.u32 %s116_s9, 4  ;;  %p69_p0 = scmp.ne.s32.totalorder %s169_s1, %s68_s13  ;;  %s18_s10 = int_to_ptr.vmem [resolvable:$true] %s17_s10 }
   0x3   :  { %p72_p1 = scmp.lt.u32.totalorder %s68_s13, %s169_s1 }
   0x5   :  { %p74_p2 = pnand %p72_p1, %p69_p0 }
   0x7   :  { %77 = shalt.err (!%p74_p2)
}
   0x8   :  { %s78_s18 = scalar_lea.vmem %s18_s10, 256  ;;  %p83_p4 = scmp.lt.s32.totalorder %s18_s10, %s18_s10 }
   0x9   :  { %p79_p3 = scmp.ne.s32.totalorder %s18_s10, %s78_s18  ;;  %p84_p5 = scmp.lt.s32.totalorder %s78_s18, %s78_s18 }
   0xb   :  { %p85_p6 = por %p84_p5, %p83_p4 }
   0xd   :  { %p86_p7 = pnand %p85_p6, %p79_p3 }
   0xf   :  { %89 = shalt.err (!%p86_p7)
}
  0x10   :  { %s117_s19 = smov 128   ;;  %s118_s20 = smov 8  }
  0x11   :  { %23 = dma.hbm_to_vmem [thread:$0]  %s169_s1, 256, %s18_s10, [#allocation4], %s117_s19, %s117_s19, %s118_s20  }
  0x12   :  { %112 = dma.done.wait [#allocation4], 256  }
  0x13   :  { %113 = vsyncadd [#allocation4], 4294967040  ;;  %v27_v0 = vld [vmem:[#allocation3] sm:$0xff]  ;;  %v28_v1 = vld [vmem:[#allocation3 + $0x8] sm:$0xff]  ;;  %v38_v7 = vstv %s168_s0  ;;  %s119_s25 = smov [#allocation6]  }
  0x14   :  { %v29_v2 = vmul.f32 0.5, %v27_v0  ;;  %v30_v3 = vmul.f32 0.5, %v28_v1  ;;  %s48_s26 = sshll.u32 %s119_s25, 4  ;;  %s49_s26 = int_to_ptr.vmem [resolvable:$true] %s48_s26 }
  0x15   :  { %s90_s1 = scalar_lea.vmem %s49_s26, 256  ;;  %p95_p9 = scmp.lt.s32.totalorder %s49_s26, %s49_s26 }
  0x16   :  { %64 = vtanh.f32 %v29_v2  ;;  %p91_p8 = scmp.ne.s32.totalorder %s49_s26, %s90_s1  ;;  %p96_p10 = scmp.lt.s32.totalorder %s90_s1, %s90_s1 }
  0x17   :  { %66 = vtanh.f32 %v30_v3 }
  0x18   :  { %p97_p11 = por %p96_p10, %p95_p9 }
  0x1a   :  { %p98_p12 = pnand %p97_p11, %p91_p8 }
  0x20   :  { %v65_v4 = vpop.eup %64 }
  0x21   :  { %v67_v5 = vpop.eup %66  ;;  %v33_v6 = vmul.f32 0.5, %v65_v4 }
  0x22   :  { %v34_v8 = vmul.f32 0.5, %v67_v5 }
  0x23   :  { %v35_v9 = vadd.f32 0.5, %v33_v6 }
  0x24   :  { %v36_v10 = vadd.f32 0.5, %v34_v8 }
  0x25   :  { %v39_v11 = vmul.f32 %v38_v7, %v35_v9 }
  0x26   :  { %v40_v12 = vmul.f32 %v38_v7, %v36_v10 }
  0x27   :  { %41 = vst [vmem:[#allocation6] sm:$0xff] %v39_v11 }
  0x28   :  { %42 = vst [vmem:[#allocation6 + $0x8] sm:$0xff] %v40_v12 }
  0x29   :  { %101 = shalt.err (!%p98_p12)
}
  0x2a   :  { %s102_s0 = scalar_lea.hbm %s170_s2, 256 }
  0x2b   :  { %p103_p13 = scmp.ne.s32.totalorder %s170_s2, %s102_s0  ;;  %p106_p0 = scmp.lt.u32.totalorder %s102_s0, %s170_s2 }
  0x2d   :  { %p108_p1 = pnand %p106_p0, %p103_p13 }
  0x2f   :  { %111 = shalt.err (!%p108_p1)
}
  0x30   :  { %54 = dma.vmem_to_hbm [thread:$0]  %s49_s26, 256, %s170_s2, [#allocation5], %s117_s19, %s117_s19, %s118_s20  }
  0x31   :  { %114 = dma.done.wait [#allocation5], 256  }
  0x32   :  { %115 = vsyncadd [#allocation5], 4294967040 }
  0x33   :  { %58 = vsyncpa [#allocation4], 1 }
  0x34   :  { %59 = vsyncpa [#allocation5], 1 }

</bundles_post_ra>
